<compile_context>
chip_gen: v7x
topology: tpu7x:2x2x1
jax: 0.10.0
libtpu: 0.0.40
codegen_flags: <defaults>
</compile_context>

<pallas_src>
import jax
import jax.numpy as jnp
from jax.experimental import pallas as pl
from jax.experimental.pallas import tpu as pltpu


def _grad_loss_kernel(gen_ref, gt_ref, out_ref):
    gen = gen_ref[...].astype(jnp.float32)   # (TB, H, W)
    gt = gt_ref[...].astype(jnp.float32)     # (TB, H, W)
    _, H, W = gen.shape

    # Edge masks, built once per block, broadcast across the TB images.
    col = jax.lax.broadcasted_iota(jnp.int32, (1, H, W), 2)
    row = jax.lax.broadcasted_iota(jnp.int32, (1, H, W), 1)
    not_last_col = col < (W - 1)
    not_last_row = row < (H - 1)

    def dx(x):
        # next element along W (zero beyond the right edge)
        nxt = jnp.where(not_last_col, pltpu.roll(x, shift=W - 1, axis=2), 0.0)
        return jnp.abs(nxt - x)

    def dy(x):
        # next element along H (zero beyond the bottom edge)
        nxt = jnp.where(not_last_row, pltpu.roll(x, shift=H - 1, axis=1), 0.0)
        return jnp.abs(x - nxt)

    grad_diff_x = jnp.abs(dx(gt) - dx(gen))
    grad_diff_y = jnp.abs(dy(gt) - dy(gen))
    partial = jnp.sum(grad_diff_x + grad_diff_y)

    # One partial sum per grid step; replicate into the (1, 8, 128) output
    # tile (wrapper reads [:, 0, 0]). Keeps the grid axis fully parallel.
    out_ref[...] = jnp.full(out_ref.shape, partial, dtype=jnp.float32)


def gradient_loss(gen_frames, gt_frames):
    """gen_frames, gt_frames: (N, C, H, W) float (NCHW, like PyTorch)."""
    N, C, H, W = gen_frames.shape
    NC = N * C
    total = N * C * H * W

    gen2 = gen_frames.reshape(NC, H, W)
    gt2 = gt_frames.reshape(NC, H, W)

    # Batch many (H, W) slices per block. Budget ~4 MiB per input block so
    # 2 inputs x 2 pipeline buffers stay ~16 MiB (fits every generation,
    # including v7x's 64 MiB VMEM).
    per_image_bytes = H * W * 4
    TB = max(1, min(NC, (4 * 1024 * 1024) // per_image_bytes))

    # Pad the image axis to a multiple of TB; zero images contribute 0 to the
    # sum, and we still divide by the original element count.
    num_blocks = pl.cdiv(NC, TB)
    NCp = num_blocks * TB
    if NCp != NC:
        pad = NCp - NC
        gen2 = jnp.pad(gen2, ((0, pad), (0, 0), (0, 0)))
        gt2 = jnp.pad(gt2, ((0, pad), (0, 0), (0, 0)))

    out = pl.pallas_call(
        _grad_loss_kernel,
        out_shape=jax.ShapeDtypeStruct((num_blocks, 8, 128), jnp.float32),
        grid_spec=pltpu.PrefetchScalarGridSpec(
            num_scalar_prefetch=0,
            grid=(num_blocks,),
            in_specs=[
                pl.BlockSpec((TB, H, W), lambda i: (i, 0, 0)),
                pl.BlockSpec((TB, H, W), lambda i: (i, 0, 0)),
            ],
            out_specs=pl.BlockSpec((1, 8, 128), lambda i: (i, 0, 0)),
        ),
        compiler_params=pltpu.CompilerParams(
            dimension_semantics=("parallel",),
            vmem_limit_bytes=48 * 1024 * 1024,
        ),
    )(gen2, gt2)

    return jnp.sum(out[:, 0, 0]) * (1.0 / total)


def _reference_loss(gen, gt):
    # Plain-JAX reference matching the PyTorch forward exactly.
    def dx(x):
        xp = jnp.pad(x, ((0, 0), (0, 0), (0, 0), (0, 1)))
        return jnp.abs(xp[..., :, 1:] - xp[..., :, :-1])

    def dy(x):
        xp = jnp.pad(x, ((0, 0), (0, 0), (0, 1), (0, 0)))
        return jnp.abs(xp[..., :-1, :] - xp[..., 1:, :])

    return jnp.mean(jnp.abs(dx(gt) - dx(gen)) + jnp.abs(dy(gt) - dy(gen)))


if __name__ == "__main__":
    key = jax.random.PRNGKey(0)
    k1, k2 = jax.random.split(key)
    # small NCHW shapes consistent with the module: batch=2, channels=4, 16x16
    gen = jax.random.normal(k1, (2, 4, 16, 16), dtype=jnp.float32)
    gt = jax.random.normal(k2, (2, 4, 16, 16), dtype=jnp.float32)

    out = gradient_loss(gen, gt)
    jax.block_until_ready(out)

    ref = _reference_loss(gen, gt)
    assert jnp.allclose(out, ref, rtol=1e-5, atol=1e-5), (out, ref)
    print("KERNEL_OK")
</pallas_src>

<mosaic_0001>
module attributes {stable_mosaic.version = 11 : i64} {
  func.func @_grad_loss_kernel(%arg0: i32, %arg1: memref<8x16x16xf32, #tpu.memory_space<vmem>>, %arg2: memref<8x16x16xf32, #tpu.memory_space<vmem>>, %arg3: memref<1x8x128xf32, #tpu.memory_space<vmem>>) attributes {dimension_semantics = [#tpu.dimension_semantics<parallel>], iteration_bounds = array<i64: 1>, scalar_prefetch = 0 : i64, scratch_operands = 0 : i64, tpu.core_type = #tpu.core_type<tc>, window_params = [{transform_indices = @transform_0, window_bounds = array<i64: 8, 16, 16>}, {transform_indices = @transform_1, window_bounds = array<i64: 8, 16, 16>}, {transform_indices = @transform_2, window_bounds = array<i64: 1, 8, 128>}]} {
    %c0 = arith.constant 0 : index
    %c0_0 = arith.constant 0 : index
    %c0_1 = arith.constant 0 : index
    %0 = vector.load %arg1[%c0, %c0_0, %c0_1] : memref<8x16x16xf32, #tpu.memory_space<vmem>>, vector<8x16x16xf32>
    %c0_2 = arith.constant 0 : index
    %c0_3 = arith.constant 0 : index
    %c0_4 = arith.constant 0 : index
    %1 = vector.load %arg2[%c0_2, %c0_3, %c0_4] : memref<8x16x16xf32, #tpu.memory_space<vmem>>, vector<8x16x16xf32>
    %2 = tpu.iota {dimensions = array<i32: 2>} : vector<1x16x16xi32>
    %3 = tpu.iota {dimensions = array<i32: 1>} : vector<1x16x16xi32>
    %c15_i32 = arith.constant 15 : i32
    %4 = vector.broadcast %c15_i32 : i32 to vector<1x16x16xi32>
    %5 = arith.cmpi slt, %2, %4 : vector<1x16x16xi32>
    %c15_i32_5 = arith.constant 15 : i32
    %6 = vector.broadcast %c15_i32_5 : i32 to vector<1x16x16xi32>
    %7 = arith.cmpi slt, %3, %6 : vector<1x16x16xi32>
    %c15_i32_6 = arith.constant 15 : i32
    %8 = tpu.dynamic_rotate %1 by %c15_i32_6 dim 2 : vector<8x16x16xf32>, i32 -> vector<8x16x16xf32>
    %cst = arith.constant 0.000000e+00 : f32
    %9 = vector.shape_cast %5 : vector<1x16x16xi1> to vector<1x16x16xi1>
    %10 = vector.broadcast %9 : vector<1x16x16xi1> to vector<8x16x16xi1>
    %11 = vector.broadcast %cst : f32 to vector<8x16x16xf32>
    %12 = arith.select %10, %8, %11 : vector<8x16x16xi1>, vector<8x16x16xf32>
    %13 = arith.subf %12, %1 : vector<8x16x16xf32>
    %14 = math.absf %13 : vector<8x16x16xf32>
    %c15_i32_7 = arith.constant 15 : i32
    %15 = tpu.dynamic_rotate %0 by %c15_i32_7 dim 2 : vector<8x16x16xf32>, i32 -> vector<8x16x16xf32>
    %cst_8 = arith.constant 0.000000e+00 : f32
    %16 = vector.shape_cast %5 : vector<1x16x16xi1> to vector<1x16x16xi1>
    %17 = vector.broadcast %16 : vector<1x16x16xi1> to vector<8x16x16xi1>
    %18 = vector.broadcast %cst_8 : f32 to vector<8x16x16xf32>
    %19 = arith.select %17, %15, %18 : vector<8x16x16xi1>, vector<8x16x16xf32>
    %20 = arith.subf %19, %0 : vector<8x16x16xf32>
    %21 = math.absf %20 : vector<8x16x16xf32>
    %22 = arith.subf %14, %21 : vector<8x16x16xf32>
    %23 = math.absf %22 : vector<8x16x16xf32>
    %c15_i32_9 = arith.constant 15 : i32
    %24 = tpu.dynamic_rotate %1 by %c15_i32_9 dim 1 : vector<8x16x16xf32>, i32 -> vector<8x16x16xf32>
    %cst_10 = arith.constant 0.000000e+00 : f32
    %25 = vector.shape_cast %7 : vector<1x16x16xi1> to vector<1x16x16xi1>
    %26 = vector.broadcast %25 : vector<1x16x16xi1> to vector<8x16x16xi1>
    %27 = vector.broadcast %cst_10 : f32 to vector<8x16x16xf32>
    %28 = arith.select %26, %24, %27 : vector<8x16x16xi1>, vector<8x16x16xf32>
    %29 = arith.subf %1, %28 : vector<8x16x16xf32>
    %30 = math.absf %29 : vector<8x16x16xf32>
    %c15_i32_11 = arith.constant 15 : i32
    %31 = tpu.dynamic_rotate %0 by %c15_i32_11 dim 1 : vector<8x16x16xf32>, i32 -> vector<8x16x16xf32>
    %cst_12 = arith.constant 0.000000e+00 : f32
    %32 = vector.shape_cast %7 : vector<1x16x16xi1> to vector<1x16x16xi1>
    %33 = vector.broadcast %32 : vector<1x16x16xi1> to vector<8x16x16xi1>
    %34 = vector.broadcast %cst_12 : f32 to vector<8x16x16xf32>
    %35 = arith.select %33, %31, %34 : vector<8x16x16xi1>, vector<8x16x16xf32>
    %36 = arith.subf %0, %35 : vector<8x16x16xf32>
    %37 = math.absf %36 : vector<8x16x16xf32>
    %38 = arith.subf %30, %37 : vector<8x16x16xf32>
    %39 = math.absf %38 : vector<8x16x16xf32>
    %40 = arith.addf %23, %39 : vector<8x16x16xf32>
    %41 = vector.shape_cast %40 : vector<8x16x16xf32> to vector<1x8x16x16xf32>
    %cst_13 = arith.constant dense<0.000000e+00> : vector<1xf32>
    %42 = vector.multi_reduction <add>, %41, %cst_13 [1, 2, 3] : vector<1x8x16x16xf32> to vector<1xf32>
    %43 = vector.shape_cast %42 : vector<1xf32> to vector<1x1x1x1xf32>
    %44 = vector.extract %43[0, 0, 0, 0] : f32 from vector<1x1x1x1xf32>
    %45 = vector.broadcast %44 : f32 to vector<1x8x128xf32>
    %c0_14 = arith.constant 0 : index
    %c0_15 = arith.constant 0 : index
    %c0_16 = arith.constant 0 : index
    %46 = vector.load %arg3[%c0_14, %c0_15, %c0_16] : memref<1x8x128xf32, #tpu.memory_space<vmem>>, vector<1x8x128xf32>
    tpu.vector_store %arg3[%c0_14, %c0_15, %c0_16], %45 {strides = array<i32>} : memref<1x8x128xf32, #tpu.memory_space<vmem>>, vector<1x8x128xf32>,
    return
  }
  func.func @transform_0(%arg0: i32) -> (i32, i32, i32) {
    %c0_i32 = arith.constant 0 : i32
    %c0_i32_0 = arith.constant 0 : i32
    %c0_i32_1 = arith.constant 0 : i32
    return %arg0, %c0_i32, %c0_i32_0 : i32, i32, i32
  }
  func.func @transform_1(%arg0: i32) -> (i32, i32, i32) {
    %c0_i32 = arith.constant 0 : i32
    %c0_i32_0 = arith.constant 0 : i32
    %c0_i32_1 = arith.constant 0 : i32
    return %arg0, %c0_i32, %c0_i32_0 : i32, i32, i32
  }
  func.func @transform_2(%arg0: i32) -> (i32, i32, i32) {
    %c0_i32 = arith.constant 0 : i32
    %c0_i32_0 = arith.constant 0 : i32
    %c0_i32_1 = arith.constant 0 : i32
    return %arg0, %c0_i32, %c0_i32_0 : i32, i32, i32
  }
}

</mosaic_0001>

<bundles_post_ra>
// kernel: tpu_custom_call.1
= control target key start
LH: loop header
LB: loop body
LE: loop exit
PB: predicated region body
PF: predicated region fallthrough
CT: control target
= control target key end

     0   :  { %7 = vsyncpa [#allocation3], 0  ;;  %s1650_s0 = inlined_call_operand.hbm [shape: f32[8,16,16], index: 0, kind: input, shape index: {}]   ;;  %s1651_s1 = inlined_call_operand.hbm [shape: f32[8,16,16], index: 1, kind: input, shape index: {}]   ;;  %s1652_s2 = inlined_call_operand.hbm [shape: f32[1,8,128], index: 2, kind: output, shape index: {}]  }
   0x1   :  { %8 = vsyncpa [#allocation6], 0 }
   0x2   :  { %9 = vsyncpa [#allocation4], 0  ;;  %s893_s9 = smov [#allocation2]   ;;  %s821_s13 = scalar_lea.hbm %s1650_s0, 2048 }
   0x3   :  { %s15_s10 = sshll.u32 %s893_s9, 4  ;;  %p822_p0 = scmp.ne.s32.totalorder %s1650_s0, %s821_s13  ;;  %s16_s10 = int_to_ptr.vmem [resolvable:$true] %s15_s10 }
   0x4   :  { %p825_p1 = scmp.lt.u32.totalorder %s821_s13, %s1650_s0 }
   0x6   :  { %p827_p2 = pnand %p825_p1, %p822_p0 }
   0x8   :  { %830 = shalt.err (!%p827_p2)
}
   0x9   :  { %s831_s18 = scalar_lea.vmem %s16_s10, 2048  ;;  %p836_p4 = scmp.lt.s32.totalorder %s16_s10, %s16_s10 }
   0xa   :  { %p832_p3 = scmp.ne.s32.totalorder %s16_s10, %s831_s18  ;;  %p837_p5 = scmp.lt.s32.totalorder %s831_s18, %s831_s18 }
   0xc   :  { %p838_p6 = por %p837_p5, %p836_p4 }
   0xe   :  { %p839_p7 = pnand %p838_p6, %p832_p3 }
  0x10   :  { %842 = shalt.err (!%p839_p7)
}
  0x11   :  { %s894_s19 = smov 128   ;;  %s895_s20 = smov 8  }
  0x12   :  { %21 = dma.hbm_to_vmem [thread:$0]  %s1650_s0, 2048, %s16_s10, [#allocation3], %s894_s19, %s894_s19, %s895_s20  }
  0x13   :  { %s896_s23 = smov [#allocation5]   ;;  %s843_s27 = scalar_lea.hbm %s1651_s1, 2048 }
  0x14   :  { %s27_s24 = sshll.u32 %s896_s23, 4  ;;  %p844_p8 = scmp.ne.s32.totalorder %s1651_s1, %s843_s27  ;;  %s28_s24 = int_to_ptr.vmem [resolvable:$true] %s27_s24 }
  0x15   :  { %p847_p9 = scmp.lt.u32.totalorder %s843_s27, %s1651_s1 }
  0x17   :  { %p849_p10 = pnand %p847_p9, %p844_p8 }
  0x19   :  { %852 = shalt.err (!%p849_p10)
}
  0x1a   :  { %s853_s4 = scalar_lea.vmem %s28_s24, 2048  ;;  %p858_p12 = scmp.lt.s32.totalorder %s28_s24, %s28_s24 }
  0x1b   :  { %p854_p11 = scmp.ne.s32.totalorder %s28_s24, %s853_s4  ;;  %p859_p13 = scmp.lt.s32.totalorder %s853_s4, %s853_s4 }
  0x1d   :  { %p860_p0 = por %p859_p13, %p858_p12 }
  0x1f   :  { %p861_p1 = pnand %p860_p0, %p854_p11 }
  0x21   :  { %864 = shalt.err (!%p861_p1)
}
  0x22   :  { %33 = dma.hbm_to_vmem [thread:$0]  %s1651_s1, 2048, %s28_s24, [#allocation6], %s894_s19, %s894_s19, %s895_s20  }
  0x23   :  { %887 = dma.done.wait [#allocation3], 2048  }
  0x24   :  { %888 = vsyncadd [#allocation3], 4294965248 }
  0x25   :  { %889 = dma.done.wait [#allocation6], 2048  }
  0x26   :  { %890 = vsyncadd [#allocation6], 4294965248  ;;  %v939_v0 = vld [vmem:[#allocation5] sm:$0xff]  ;;  %s897_s6 = smov 16   ;;  %v947_v2 = vld [vmem:[#allocation5 + $0x8] sm:$0xff]  ;;  %vm80_vm0 = vcmask 1047680  }
  0x27   :  { %v941_v1 = vld [vmem:[#allocation2] sm:$0xff]  ;;  %81 = vrot.lane.b32.xlu0 %v939_v0, %s897_s6  ;;  %v949_v3 = vld [vmem:[#allocation2 + $0x8] sm:$0xff]  ;;  %v955_v4 = vld [vmem:[#allocation5 + $0x10] sm:$0xff]  ;;  %s898_s1 = smov 127   ;;  %vm744_vm4 = vcmask 130048   ;;  %s899_s7 = smov [#allocation7]  }
  0x28   :  { %291 = vrot.lane.b32.xlu1 %v941_v1, %s897_s6  ;;  %v957_v5 = vld [vmem:[#allocation2 + $0x10] sm:$0xff]  ;;  %v963_v6 = vld [vmem:[#allocation5 + $0x18] sm:$0xff]  ;;  %v971_v8 = vld [vmem:[#allocation5 + $0x20] sm:$0xff]  ;;  %s793_s8 = sshll.u32 %s899_s7, 4  ;;  %s794_s8 = int_to_ptr.vmem [resolvable:$true] %s793_s8 }
  0x29   :  { %v965_v7 = vld [vmem:[#allocation2 + $0x18] sm:$0xff]  ;;  %v973_v9 = vld [vmem:[#allocation2 + $0x20] sm:$0xff]  ;;  %v979_v10 = vld [vmem:[#allocation5 + $0x28] sm:$0xff]  ;;  %s865_s10 = scalar_lea.vmem %s794_s8, 128  ;;  %p870_p3 = scmp.lt.s32.totalorder %s794_s8, %s794_s8 }
  0x2a   :  { %1667 = vst [vmem:[#allocation11_spill] sm:$0xff] %v973_v9  ;;  %1668 = vst [vmem:[#allocation12_spill] sm:$0xff] %v979_v10  ;;  %v981_v11 = vld [vmem:[#allocation2 + $0x28] sm:$0xff]  ;;  %v987_v12 = vld [vmem:[#allocation5 + $0x30] sm:$0xff]  ;;  %p866_p2 = scmp.ne.s32.totalorder %s794_s8, %s865_s10  ;;  %p871_p4 = scmp.lt.s32.totalorder %s865_s10, %s865_s10 }
  0x2b   :  { %84 = vrot.lane.b32.xlu0 %v947_v2, %s897_s6  ;;  %1669 = vst [vmem:[#allocation13_spill] sm:$0xff] %v981_v11  ;;  %1670 = vst [vmem:[#allocation14_spill] sm:$0xff] %v987_v12  ;;  %v989_v13 = vld [vmem:[#allocation2 + $0x30] sm:$0xff]  ;;  %v995_v14 = vld [vmem:[#allocation5 + $0x38] sm:$0xff] }
  0x2c   :  { %294 = vrot.lane.b32.xlu1 %v949_v3, %s897_s6  ;;  %1671 = vst [vmem:[#allocation15_spill] sm:$0xff] %v989_v13  ;;  %1672 = vst [vmem:[#allocation16_spill] sm:$0xff] %v995_v14  ;;  %v997_v15 = vld [vmem:[#allocation2 + $0x38] sm:$0xff]  ;;  %v1003_v16 = vld [vmem:[#allocation5 + $0x40] sm:$0xff]  ;;  %p872_p5 = por %p871_p4, %p870_p3 }
  0x2d   :  { %1673 = vst [vmem:[#allocation17_spill] sm:$0xff] %v997_v15  ;;  %1674 = vst [vmem:[#allocation18_spill] sm:$0xff] %v1003_v16  ;;  %v1005_v17 = vld [vmem:[#allocation2 + $0x40] sm:$0xff]  ;;  %v1011_v18 = vld [vmem:[#allocation5 + $0x48] sm:$0xff] }
  0x2e   :  { %1675 = vst [vmem:[#allocation19_spill] sm:$0xff] %v1005_v17  ;;  %1676 = vst [vmem:[#allocation20_spill] sm:$0xff] %v1011_v18  ;;  %v1013_v19 = vld [vmem:[#allocation2 + $0x48] sm:$0xff]  ;;  %v1019_v20 = vld [vmem:[#allocation5 + $0x50] sm:$0xff]  ;;  %p873_p6 = pnand %p872_p5, %p866_p2 }
  0x2f   :  { %87 = vrot.lane.b32.xlu0 %v955_v4, %s897_s6  ;;  %1677 = vst [vmem:[#allocation21_spill] sm:$0xff] %v1019_v20  ;;  %v1021_v21 = vld [vmem:[#allocation2 + $0x50] sm:$0xff]  ;;  %v1027_v22 = vld [vmem:[#allocation5 + $0x58] sm:$0xff]  ;;  %v1035_v24 = vld [vmem:[#allocation5 + $0x60] sm:$0xff] }
  0x30   :  { %297 = vrot.lane.b32.xlu1 %v957_v5, %s897_s6  ;;  %v1029_v23 = vld [vmem:[#allocation2 + $0x58] sm:$0xff]  ;;  %v1037_v25 = vld [vmem:[#allocation2 + $0x60] sm:$0xff]  ;;  %v1043_v26 = vld [vmem:[#allocation5 + $0x68] sm:$0xff] }
  0x31   :  { %v1045_v27 = vld [vmem:[#allocation2 + $0x68] sm:$0xff]  ;;  %v1051_v28 = vld [vmem:[#allocation5 + $0x70] sm:$0xff]  ;;  %v1059_v30 = vld [vmem:[#allocation5 + $0x78] sm:$0xff] }
  0x32   :  { %v1053_v29 = vld [vmem:[#allocation2 + $0x70] sm:$0xff]  ;;  %v1061_v31 = vld [vmem:[#allocation2 + $0x78] sm:$0xff] }
  0x33   :  { %90 = vrot.lane.b32.xlu0 %v963_v6, %s897_s6  ;;  %1678 = vst [vmem:[#allocation22_spill] sm:$0xff] %v1053_v29  ;;  %1679 = vst [vmem:[#allocation23_spill] sm:$0xff] %v1061_v31 }
  0x34   :  { %300 = vrot.lane.b32.xlu1 %v965_v7, %s897_s6 }
  0x37   :  { %93 = vrot.lane.b32.xlu0 %v971_v8, %s897_s6 }
  0x38   :  { %303 = vrot.lane.b32.xlu1 %v973_v9, %s897_s6 }
  0x3b   :  { %96 = vrot.lane.b32.xlu0 %v979_v10, %s897_s6 }
  0x3c   :  { %306 = vrot.lane.b32.xlu1 %v981_v11, %s897_s6 }
  0x3f   :  { %99 = vrot.lane.b32.xlu0 %v987_v12, %s897_s6 }
  0x40   :  { %309 = vrot.lane.b32.xlu1 %v989_v13, %s897_s6 }
  0x43   :  { %102 = vrot.lane.b32.xlu0 %v995_v14, %s897_s6 }
  0x44   :  { %312 = vrot.lane.b32.xlu1 %v997_v15, %s897_s6 }
  0x47   :  { %105 = vrot.lane.b32.xlu0 %v1003_v16, %s897_s6 }
  0x48   :  { %315 = vrot.lane.b32.xlu1 %v1005_v17, %s897_s6 }
  0x4b   :  { %108 = vrot.lane.b32.xlu0 %v1011_v18, %s897_s6 }
  0x4c   :  { %318 = vrot.lane.b32.xlu1 %v1013_v19, %s897_s6 }
  0x4f   :  { %111 = vrot.lane.b32.xlu0 %v1019_v20, %s897_s6 }
  0x50   :  { %321 = vrot.lane.b32.xlu1 %v1021_v21, %s897_s6 }
  0x53   :  { %114 = vrot.lane.b32.xlu0 %v1027_v22, %s897_s6 }
  0x54   :  { %324 = vrot.lane.b32.xlu1 %v1029_v23, %s897_s6 }
  0x57   :  { %117 = vrot.lane.b32.xlu0 %v1035_v24, %s897_s6 }
  0x58   :  { %327 = vrot.lane.b32.xlu1 %v1037_v25, %s897_s6 }
  0x5b   :  { %120 = vrot.lane.b32.xlu0 %v1043_v26, %s897_s6 }
  0x5c   :  { %330 = vrot.lane.b32.xlu1 %v1045_v27, %s897_s6 }
  0x5f   :  { %123 = vrot.lane.b32.xlu0 %v1051_v28, %s897_s6 }
  0x60   :  { %333 = vrot.lane.b32.xlu1 %v1053_v29, %s897_s6 }
  0x63   :  { %126 = vrot.lane.b32.xlu0 %v1059_v30, %s897_s6 }
  0x64   :  { %336 = vrot.lane.b32.xlu1 %v1061_v31, %s897_s6 }
  0x99   :  { %v82_v32 = vpop.permute.xlu0 %81 }
  0x9a   :  { %v292_v33 = vpop.permute.xlu1 %291  ;;  %v83_v34 = vsel %vm80_vm0, %v82_v32, %v939_v0 }
  0x9b   :  { %129 = vrot.lane.b32.xlu0 %v83_v34, %s897_s6  ;;  %v293_v35 = vsel %vm80_vm0, %v292_v33, %v941_v1 }
  0x9d   :  { %v85_v36 = vpop.permute.xlu0 %84 }
  0x9e   :  { %v295_v37 = vpop.permute.xlu1 %294  ;;  %v86_v38 = vsel %vm80_vm0, %v85_v36, %v947_v2 }
  0x9f   :  { %131 = vrot.lane.b32.xlu1 %v86_v38, %s897_s6  ;;  %339 = vrot.lane.b32.xlu0 %v293_v35, %s897_s6  ;;  %v296_v39 = vsel %vm80_vm0, %v295_v37, %v949_v3 }
  0xa1   :  { %v88_v40 = vpop.permute.xlu0 %87 }
  0xa2   :  { %v298_v41 = vpop.permute.xlu1 %297  ;;  %v89_v42 = vsel %vm80_vm0, %v88_v40, %v955_v4 }
  0xa3   :  { %341 = vrot.lane.b32.xlu1 %v296_v39, %s897_s6  ;;  %133 = vrot.lane.b32.xlu0 %v89_v42, %s897_s6  ;;  %v299_v43 = vsel %vm80_vm0, %v298_v41, %v957_v5 }
  0xa5   :  { %v91_v44 = vpop.permute.xlu0 %90 }
  0xa6   :  { %v301_v45 = vpop.permute.xlu1 %300  ;;  %v92_v46 = vsel %vm80_vm0, %v91_v44, %v963_v6 }
  0xa7   :  { %343 = vrot.lane.b32.xlu1 %v299_v43, %s897_s6  ;;  %135 = vrot.lane.b32.xlu0 %v92_v46, %s897_s6  ;;  %v302_v47 = vsel %vm80_vm0, %v301_v45, %v965_v7 }
  0xa9   :  { %v94_v48 = vpop.permute.xlu0 %93 }
  0xaa   :  { %v304_v49 = vpop.permute.xlu1 %303  ;;  %v95_v50 = vsel %vm80_vm0, %v94_v48, %v971_v8 }
  0xab   :  { %345 = vrot.lane.b32.xlu1 %v302_v47, %s897_s6  ;;  %137 = vrot.lane.b32.xlu0 %v95_v50, %s897_s6  ;;  %v305_v51 = vsel %vm80_vm0, %v304_v49, %v973_v9 }
  0xad   :  { %v97_v52 = vpop.permute.xlu0 %96 }
  0xae   :  { %v307_v53 = vpop.permute.xlu1 %306  ;;  %v98_v54 = vsel %vm80_vm0, %v97_v52, %v979_v10 }
  0xaf   :  { %347 = vrot.lane.b32.xlu1 %v305_v51, %s897_s6  ;;  %139 = vrot.lane.b32.xlu0 %v98_v54, %s897_s6  ;;  %v308_v55 = vsel %vm80_vm0, %v307_v53, %v981_v11 }
  0xb1   :  { %v100_v56 = vpop.permute.xlu0 %99 }
  0xb2   :  { %v310_v57 = vpop.permute.xlu1 %309  ;;  %v101_v58 = vsel %vm80_vm0, %v100_v56, %v987_v12 }
  0xb3   :  { %349 = vrot.lane.b32.xlu1 %v308_v55, %s897_s6  ;;  %141 = vrot.lane.b32.xlu0 %v101_v58, %s897_s6  ;;  %v311_v59 = vsel %vm80_vm0, %v310_v57, %v989_v13 }
  0xb5   :  { %v103_v60 = vpop.permute.xlu0 %102 }
  0xb6   :  { %v313_v61 = vpop.permute.xlu1 %312  ;;  %v104_v62 = vsel %vm80_vm0, %v103_v60, %v995_v14 }
  0xb7   :  { %351 = vrot.lane.b32.xlu1 %v311_v59, %s897_s6  ;;  %143 = vrot.lane.b32.xlu0 %v104_v62, %s897_s6  ;;  %v314_v63 = vsel %vm80_vm0, %v313_v61, %v997_v15 }
  0xb9   :  { %v106_v32 = vpop.permute.xlu0 %105 }
  0xba   :  { %v316_v33 = vpop.permute.xlu1 %315  ;;  %v107_v34 = vsel %vm80_vm0, %v106_v32, %v1003_v16 }
  0xbb   :  { %353 = vrot.lane.b32.xlu1 %v314_v63, %s897_s6  ;;  %145 = vrot.lane.b32.xlu0 %v107_v34, %s897_s6  ;;  %v317_v35 = vsel %vm80_vm0, %v316_v33, %v1005_v17 }
  0xbd   :  { %v109_v36 = vpop.permute.xlu0 %108 }
  0xbe   :  { %v319_v37 = vpop.permute.xlu1 %318  ;;  %v110_v38 = vsel %vm80_vm0, %v109_v36, %v1011_v18 }
  0xbf   :  { %355 = vrot.lane.b32.xlu1 %v317_v35, %s897_s6  ;;  %147 = vrot.lane.b32.xlu0 %v110_v38, %s897_s6  ;;  %v320_v39 = vsel %vm80_vm0, %v319_v37, %v1013_v19 }
  0xc1   :  { %v112_v40 = vpop.permute.xlu0 %111 }
  0xc2   :  { %v322_v41 = vpop.permute.xlu1 %321  ;;  %v113_v42 = vsel %vm80_vm0, %v112_v40, %v1019_v20 }
  0xc3   :  { %357 = vrot.lane.b32.xlu1 %v320_v39, %s897_s6  ;;  %149 = vrot.lane.b32.xlu0 %v113_v42, %s897_s6  ;;  %v323_v43 = vsel %vm80_vm0, %v322_v41, %v1021_v21 }
  0xc5   :  { %v115_v44 = vpop.permute.xlu0 %114 }
  0xc6   :  { %v325_v45 = vpop.permute.xlu1 %324  ;;  %v116_v46 = vsel %vm80_vm0, %v115_v44, %v1027_v22 }
  0xc7   :  { %359 = vrot.lane.b32.xlu1 %v323_v43, %s897_s6  ;;  %151 = vrot.lane.b32.xlu0 %v116_v46, %s897_s6  ;;  %v326_v47 = vsel %vm80_vm0, %v325_v45, %v1029_v23 }
  0xc9   :  { %v118_v48 = vpop.permute.xlu0 %117 }
  0xca   :  { %v328_v49 = vpop.permute.xlu1 %327  ;;  %v119_v50 = vsel %vm80_vm0, %v118_v48, %v1035_v24 }
  0xcb   :  { %361 = vrot.lane.b32.xlu1 %v326_v47, %s897_s6  ;;  %153 = vrot.lane.b32.xlu0 %v119_v50, %s897_s6  ;;  %v329_v51 = vsel %vm80_vm0, %v328_v49, %v1037_v25 }
  0xcd   :  { %v121_v52 = vpop.permute.xlu0 %120 }
  0xce   :  { %v331_v53 = vpop.permute.xlu1 %330  ;;  %v122_v54 = vsel %vm80_vm0, %v121_v52, %v1043_v26 }
  0xcf   :  { %363 = vrot.lane.b32.xlu1 %v329_v51, %s897_s6  ;;  %155 = vrot.lane.b32.xlu0 %v122_v54, %s897_s6  ;;  %v332_v55 = vsel %vm80_vm0, %v331_v53, %v1045_v27 }
  0xd1   :  { %v124_v56 = vpop.permute.xlu0 %123 }
  0xd2   :  { %v334_v57 = vpop.permute.xlu1 %333  ;;  %v125_v58 = vsel %vm80_vm0, %v124_v56, %v1051_v28 }
  0xd3   :  { %365 = vrot.lane.b32.xlu1 %v332_v55, %s897_s6  ;;  %157 = vrot.lane.b32.xlu0 %v125_v58, %s897_s6  ;;  %v335_v59 = vsel %vm80_vm0, %v334_v57, %v1053_v29 }
  0xd5   :  { %v127_v60 = vpop.permute.xlu0 %126 }
  0xd6   :  { %v337_v61 = vpop.permute.xlu1 %336  ;;  %v128_v62 = vsel %vm80_vm0, %v127_v60, %v1059_v30 }
  0xd7   :  { %367 = vrot.lane.b32.xlu1 %v335_v59, %s897_s6  ;;  %159 = vrot.lane.b32.xlu0 %v128_v62, %s897_s6  ;;  %v338_v63 = vsel %vm80_vm0, %v337_v61, %v1061_v31 }
  0xdb   :  { %369 = vrot.lane.b32.xlu1 %v338_v63, %s897_s6 }
 0x10d   :  { %v130_v32 = vpop.permute.xlu0 %129 }
 0x10e   :  { %v161_v33 = vsel %vm80_vm0, %v130_v32, %v939_v0 }
 0x10f   :  { %195 = vrot.lane.b32.xlu0 %v161_v33, %s898_s1 }
 0x111   :  { %v340_v34 = vpop.permute.xlu0 %339  ;;  %v132_v35 = vpop.permute.xlu1 %131 }
 0x112   :  { %v371_v36 = vsel %vm80_vm0, %v340_v34, %v941_v1  ;;  %v162_v37 = vsel %vm80_vm0, %v132_v35, %v947_v2 }
 0x113   :  { %403 = vrot.lane.b32.xlu0 %v371_v36, %s898_s1  ;;  %197 = vrot.lane.b32.xlu1 %v162_v37, %s898_s1 }
 0x115   :  { %v342_v38 = vpop.permute.xlu1 %341  ;;  %v134_v39 = vpop.permute.xlu0 %133 }
 0x116   :  { %v372_v40 = vsel %vm80_vm0, %v342_v38, %v949_v3  ;;  %v163_v41 = vsel %vm80_vm0, %v134_v39, %v955_v4 }
 0x117   :  { %405 = vrot.lane.b32.xlu1 %v372_v40, %s898_s1  ;;  %199 = vrot.lane.b32.xlu0 %v163_v41, %s898_s1 }
 0x119   :  { %v344_v42 = vpop.permute.xlu1 %343  ;;  %v136_v43 = vpop.permute.xlu0 %135 }
 0x11a   :  { %v373_v44 = vsel %vm80_vm0, %v344_v42, %v957_v5  ;;  %v164_v45 = vsel %vm80_vm0, %v136_v43, %v963_v6 }
 0x11b   :  { %407 = vrot.lane.b32.xlu1 %v373_v44, %s898_s1  ;;  %201 = vrot.lane.b32.xlu0 %v164_v45, %s898_s1 }
 0x11d   :  { %v346_v46 = vpop.permute.xlu1 %345  ;;  %v138_v47 = vpop.permute.xlu0 %137 }
 0x11e   :  { %v374_v48 = vsel %vm80_vm0, %v346_v46, %v965_v7  ;;  %v165_v49 = vsel %vm80_vm0, %v138_v47, %v971_v8 }
 0x11f   :  { %409 = vrot.lane.b32.xlu1 %v374_v48, %s898_s1  ;;  %203 = vrot.lane.b32.xlu0 %v165_v49, %s898_s1 }
 0x121   :  { %v348_v50 = vpop.permute.xlu1 %347  ;;  %v140_v51 = vpop.permute.xlu0 %139 }
 0x122   :  { %v375_v52 = vsel %vm80_vm0, %v348_v50, %v973_v9  ;;  %v166_v53 = vsel %vm80_vm0, %v140_v51, %v979_v10 }
 0x123   :  { %411 = vrot.lane.b32.xlu1 %v375_v52, %s898_s1  ;;  %205 = vrot.lane.b32.xlu0 %v166_v53, %s898_s1 }
 0x125   :  { %v350_v54 = vpop.permute.xlu1 %349  ;;  %v142_v55 = vpop.permute.xlu0 %141 }
 0x126   :  { %v376_v56 = vsel %vm80_vm0, %v350_v54, %v981_v11  ;;  %v167_v57 = vsel %vm80_vm0, %v142_v55, %v987_v12 }
 0x127   :  { %413 = vrot.lane.b32.xlu1 %v376_v56, %s898_s1  ;;  %207 = vrot.lane.b32.xlu0 %v167_v57, %s898_s1 }
 0x129   :  { %v352_v58 = vpop.permute.xlu1 %351  ;;  %v144_v59 = vpop.permute.xlu0 %143 }
 0x12a   :  { %v377_v60 = vsel %vm80_vm0, %v352_v58, %v989_v13  ;;  %v168_v61 = vsel %vm80_vm0, %v144_v59, %v995_v14 }
 0x12b   :  { %415 = vrot.lane.b32.xlu1 %v377_v60, %s898_s1  ;;  %209 = vrot.lane.b32.xlu0 %v168_v61, %s898_s1 }
 0x12d   :  { %v354_v62 = vpop.permute.xlu1 %353  ;;  %v146_v63 = vpop.permute.xlu0 %145 }
 0x12e   :  { %v378_v32 = vsel %vm80_vm0, %v354_v62, %v997_v15  ;;  %v169_v33 = vsel %vm80_vm0, %v146_v63, %v1003_v16 }
 0x12f   :  { %417 = vrot.lane.b32.xlu1 %v378_v32, %s898_s1  ;;  %211 = vrot.lane.b32.xlu0 %v169_v33, %s898_s1  ;;  %v72_v32 = vlaneseq }
 0x131   :  { %v356_v34 = vpop.permute.xlu1 %355  ;;  %v148_v35 = vpop.permute.xlu0 %147  ;;  %v1259_v33 = vshrl.u32 %v72_v32, 7 }
 0x132   :  { %v379_v36 = vsel %vm80_vm0, %v356_v34, %v1005_v17  ;;  %v170_v37 = vsel %vm80_vm0, %v148_v35, %v1011_v18  ;;  %v531_v34 = vrot.slane %v939_v0, 1  ;;  %v539_v35 = vrot.slane %v947_v2, 1 }
 0x133   :  { %419 = vrot.lane.b32.xlu1 %v379_v36, %s898_s1  ;;  %213 = vrot.lane.b32.xlu0 %v170_v37, %s898_s1  ;;  %vm547_vm1 = vcmp.lt.s32.totalorder %v1259_v33, 7  ;;  %v624_v36 = vrot.slane %v949_v3, 1  ;;  %v616_v37 = vrot.slane %v941_v1, 1 }
 0x135   :  { %v358_v38 = vpop.permute.xlu1 %357  ;;  %v150_v39 = vpop.permute.xlu0 %149 }
 0x136   :  { %v380_v40 = vsel %vm80_vm0, %v358_v38, %v1013_v19  ;;  %v171_v41 = vsel %vm80_vm0, %v150_v39, %v1019_v20  ;;  %v1267_v38 = vadd.s32 8, %v1259_v33  ;;  %v548_v39 = vsel %vm547_vm1, %v531_v34, %v539_v35  ;;  %v1694_v33 = vld [vmem:[#allocation19_spill] sm:$0xff] }
 0x137   :  { %421 = vrot.lane.b32.xlu1 %v380_v40, %s898_s1  ;;  %215 = vrot.lane.b32.xlu0 %v171_v41, %s898_s1  ;;  %v632_v40 = vsel %vm547_vm1, %v616_v37, %v624_v36  ;;  %v556_v41 = vsel %vm547_vm1, %v539_v35, %v531_v34  ;;  %v626_v34 = vrot.slane %v981_v11, 1 }
 0x138   :  { %vm79_vm2 = vcmp.lt.s32.totalorder %v1267_v38, 15 }
 0x139   :  { %v360_v42 = vpop.permute.xlu1 %359  ;;  %v152_v43 = vpop.permute.xlu0 %151 }
 0x13a   :  { %v381_v44 = vsel %vm80_vm0, %v360_v42, %v1021_v21  ;;  %v172_v45 = vsel %vm80_vm0, %v152_v43, %v1027_v22  ;;  %v640_v42 = vsel %vm547_vm1, %v624_v36, %v616_v37  ;;  %v532_v43 = vrot.slane %v955_v4, 1 }
 0x13b   :  { %423 = vrot.lane.b32.xlu1 %v381_v44, %s898_s1  ;;  %217 = vrot.lane.b32.xlu0 %v172_v45, %s898_s1  ;;  %v540_v44 = vrot.slane %v963_v6, 1  ;;  %v617_v45 = vrot.slane %v957_v5, 1 }
 0x13d   :  { %v362_v46 = vpop.permute.xlu1 %361  ;;  %v154_v47 = vpop.permute.xlu0 %153 }
 0x13e   :  { %v382_v48 = vsel %vm80_vm0, %v362_v46, %v1029_v23  ;;  %v173_v49 = vsel %vm80_vm0, %v154_v47, %v1035_v24  ;;  %v625_v46 = vrot.slane %v965_v7, 1  ;;  %v584_v47 = vsub.f32 %v939_v0, %v548_v39 }
 0x13f   :  { %425 = vrot.lane.b32.xlu1 %v382_v48, %s898_s1  ;;  %219 = vrot.lane.b32.xlu0 %v173_v49, %s898_s1  ;;  %v664_v48 = vsub.f32 %v941_v1, %v632_v40  ;;  %v569_v49 = vsel %vm79_vm2, %v556_v41, 0.0 }
 0x141   :  { %v364_v50 = vpop.permute.xlu1 %363  ;;  %v156_v51 = vpop.permute.xlu0 %155 }
 0x142   :  { %v383_v52 = vsel %vm80_vm0, %v364_v50, %v1037_v25  ;;  %v174_v53 = vsel %vm80_vm0, %v156_v51, %v1043_v26  ;;  %v649_v50 = vsel %vm79_vm2, %v640_v42, 0.0  ;;  %v549_v51 = vsel %vm547_vm1, %v532_v43, %v540_v44 }
 0x143   :  { %427 = vrot.lane.b32.xlu1 %v383_v52, %s898_s1  ;;  %221 = vrot.lane.b32.xlu0 %v174_v53, %s898_s1  ;;  %v633_v52 = vsel %vm547_vm1, %v617_v45, %v625_v46  ;;  %v600_v53 = vand.u32 2147483647, %v584_v47  ;;  %v534_v47 = vrot.slane %v987_v12, 1 }
 0x145   :  { %v366_v54 = vpop.permute.xlu1 %365  ;;  %v158_v55 = vpop.permute.xlu0 %157 }
 0x146   :  { %v384_v56 = vsel %vm80_vm0, %v366_v54, %v1045_v27  ;;  %v175_v57 = vsel %vm80_vm0, %v158_v55, %v1051_v28  ;;  %v680_v54 = vand.u32 2147483647, %v664_v48  ;;  %v585_v55 = vsub.f32 %v947_v2, %v569_v49 }
 0x147   :  { %429 = vrot.lane.b32.xlu1 %v384_v56, %s898_s1  ;;  %223 = vrot.lane.b32.xlu0 %v175_v57, %s898_s1  ;;  %v665_v56 = vsub.f32 %v949_v3, %v649_v50  ;;  %v586_v57 = vsub.f32 %v955_v4, %v549_v51  ;;  %v542_v48 = vrot.slane %v995_v14, 1  ;;  %v619_v51 = vrot.slane %v989_v13, 1 }
 0x148   :  { %v696_v35 = vsub.f32 %v600_v53, %v680_v54  ;;  %v1304_v36 = vand.u32 2147483647, %v585_v55  ;;  %v1330_v53 = vand.u32 127, %v72_v32 }
 0x149   :  { %v368_v58 = vpop.permute.xlu1 %367  ;;  %v160_v59 = vpop.permute.xlu0 %159  ;;  %v1306_v37 = vand.u32 2147483647, %v665_v56  ;;  %v1312_v41 = vand.u32 2147483647, %v586_v57  ;;  %v551_v32 = vsel %vm547_vm1, %v534_v47, %v542_v48 }
 0x14a   :  { %v385_v60 = vsel %vm80_vm0, %v368_v58, %v1053_v29  ;;  %v176_v61 = vsel %vm80_vm0, %v160_v59, %v1059_v30  ;;  %v666_v58 = vsub.f32 %v957_v5, %v633_v52  ;;  %v557_v59 = vsel %vm547_vm1, %v540_v44, %v532_v43 }
 0x14b   :  { %431 = vrot.lane.b32.xlu1 %v385_v60, %s898_s1  ;;  %225 = vrot.lane.b32.xlu0 %v176_v61, %s898_s1  ;;  %v641_v60 = vsel %vm547_vm1, %v625_v46, %v617_v45  ;;  %v533_v61 = vrot.slane %v971_v8, 1  ;;  %v571_v39 = vsel %vm79_vm2, %v557_v59, 0.0  ;;  %v627_v52 = vrot.slane %v997_v15, 1 }
 0x14c   :  { %v651_v40 = vsel %vm79_vm2, %v641_v60, 0.0  ;;  %v1314_v42 = vand.u32 2147483647, %v666_v58  ;;  %v587_v49 = vsub.f32 %v963_v6, %v571_v39  ;;  %v1332_v54 = vand.u32 2147483647, %v696_v35 }
 0x14d   :  { %v370_v62 = vpop.permute.xlu1 %369  ;;  %v667_v50 = vsub.f32 %v965_v7, %v651_v40  ;;  %v635_v39 = vsel %vm547_vm1, %v619_v51, %v627_v52  ;;  %v643_v40 = vsel %vm547_vm1, %v627_v52, %v619_v51  ;;  %vm77_vm3 = vcmp.lt.s32.totalorder %v1330_v53, 15 }
 0x14e   :  { %v386_v63 = vsel %vm80_vm0, %v370_v62, %v1061_v31  ;;  %v541_v62 = vrot.slane %v979_v10, 1  ;;  %1680 = vst [vmem:[#allocation24_spill] sm:$0xff] %v1332_v54  ;;  %v670_v51 = vsub.f32 %v989_v13, %v635_v39  ;;  %v655_v52 = vsel %vm79_vm2, %v643_v40, 0.0 }
 0x14f   :  { %433 = vrot.lane.b32.xlu1 %v386_v63, %s898_s1  ;;  %v618_v63 = vrot.slane %v973_v9, 1  ;;  %v1352_v35 = vand.u32 2147483647, %v667_v50 }
 0x150   :  { %v550_v43 = vsel %vm547_vm1, %v533_v61, %v541_v62  ;;  %v558_v45 = vsel %vm547_vm1, %v541_v62, %v533_v61  ;;  %v559_v61 = vsel %vm547_vm1, %v542_v48, %v534_v47  ;;  %v535_v62 = vrot.slane %v1003_v16, 1 }
 0x151   :  { %v634_v44 = vsel %vm547_vm1, %v618_v63, %v626_v34  ;;  %v642_v46 = vsel %vm547_vm1, %v626_v34, %v618_v63  ;;  %v588_v56 = vsub.f32 %v971_v8, %v550_v43  ;;  %v573_v59 = vsel %vm79_vm2, %v558_v45, 0.0 }
 0x152   :  { %v668_v58 = vsub.f32 %v973_v9, %v634_v44  ;;  %v653_v60 = vsel %vm79_vm2, %v642_v46, 0.0  ;;  %v543_v63 = vrot.slane %v1011_v18, 1  ;;  %v1350_v34 = vand.u32 2147483647, %v587_v49 }
 0x153   :  { %v1358_v43 = vand.u32 2147483647, %v588_v56  ;;  %v589_v44 = vsub.f32 %v979_v10, %v573_v59  ;;  %v620_v45 = vrot.slane %v1005_v17, 1  ;;  %v628_v46 = vrot.slane %v1013_v19, 1 }
 0x154   :  { %v1363_v47 = vand.u32 2147483647, %v668_v58  ;;  %v669_v48 = vsub.f32 %v981_v11, %v653_v60  ;;  %v590_v49 = vsub.f32 %v987_v12, %v551_v32  ;;  %v575_v50 = vsel %vm79_vm2, %v559_v61, 0.0 }
 0x155   :  { %v552_v56 = vsel %vm547_vm1, %v535_v62, %v543_v63  ;;  %v560_v58 = vsel %vm547_vm1, %v543_v63, %v535_v62  ;;  %v536_v59 = vrot.slane %v1019_v20, 1  ;;  %v544_v60 = vrot.slane %v1027_v22, 1 }
 0x156   :  { %v621_v32 = vrot.slane %v1021_v21, 1  ;;  %v629_v61 = vrot.slane %v1029_v23, 1  ;;  %v605_v55 = vand.u32 2147483647, %v589_v44  ;;  %v591_v39 = vsub.f32 %v995_v14, %v575_v50 }
 0x157   :  { %v636_v40 = vsel %vm547_vm1, %v620_v45, %v628_v46  ;;  %v644_v54 = vsel %vm547_vm1, %v628_v46, %v620_v45  ;;  %v685_v13 = vand.u32 2147483647, %v669_v48  ;;  %v577_v62 = vsel %vm79_vm2, %v560_v58, 0.0 }
 0x158   :  { %v561_v63 = vsel %vm547_vm1, %v544_v60, %v536_v59  ;;  %v645_v12 = vsel %vm547_vm1, %v629_v61, %v621_v32  ;;  %v606_v50 = vand.u32 2147483647, %v590_v49  ;;  %v686_v14 = vand.u32 2147483647, %v670_v51 }
 0x159   :  { %v671_v10 = vsub.f32 %v997_v15, %v655_v52  ;;  %v592_v31 = vsub.f32 %v1003_v16, %v552_v56  ;;  %v672_v45 = vsub.f32 %v1005_v17, %v636_v40  ;;  %v657_v46 = vsel %vm79_vm2, %v644_v54, 0.0 }
 0x15a   :  { %v553_v48 = vsel %vm547_vm1, %v536_v59, %v544_v60  ;;  %v637_v58 = vsel %vm547_vm1, %v621_v32, %v629_v61  ;;  %v607_v29 = vand.u32 2147483647, %v591_v39  ;;  %v593_v49 = vsub.f32 %v1011_v18, %v577_v62 }
 0x15b   :  { %v579_v51 = vsel %vm79_vm2, %v561_v63, 0.0  ;;  %v659_v52 = vsel %vm79_vm2, %v645_v12, 0.0  ;;  %v537_v56 = vrot.slane %v1035_v24, 1  ;;  %v545_v40 = vrot.slane %v1043_v26, 1 }
 0x15c   :  { %v622_v54 = vrot.slane %v1037_v25, 1  ;;  %v630_v59 = vrot.slane %v1045_v27, 1  ;;  %v687_v32 = vand.u32 2147483647, %v671_v10  ;;  %v673_v61 = vsub.f32 %v1013_v19, %v657_v46 }
 0x15d   :  { %v594_v39 = vsub.f32 %v1019_v20, %v553_v48  ;;  %v674_v62 = vsub.f32 %v1021_v21, %v637_v58  ;;  %v608_v63 = vand.u32 2147483647, %v592_v31  ;;  %v688_v18 = vand.u32 2147483647, %v672_v45 }
 0x15e   :  { %v595_v12 = vsub.f32 %v1027_v22, %v579_v51  ;;  %v675_v16 = vsub.f32 %v1029_v23, %v659_v52  ;;  %v1681_v15 = vsub.f32 %v1304_v36, %v1306_v37  ;;  %v699_v10 = vsub.f32 %v1350_v34, %v1352_v35 }
 0x15f   :  { %v700_v46 = vsub.f32 %v1358_v43, %v1363_v47  ;;  %v701_v48 = vsub.f32 %v605_v55, %v685_v13  ;;  %v702_v20 = vsub.f32 %v606_v50, %v686_v14  ;;  %v609_v58 = vand.u32 2147483647, %v593_v49 }
 0x160   :  { %v1422_v9 = vand.u32 2147483647, %v1681_v15  ;;  %v554_v31 = vsel %vm547_vm1, %v537_v56, %v545_v40  ;;  %v638_v23 = vsel %vm547_vm1, %v622_v54, %v630_v59  ;;  %v703_v36 = vsub.f32 %v607_v29, %v687_v32 }
 0x161   :  { %v689_v15 = vand.u32 2147483647, %v673_v61  ;;  %v610_v37 = vand.u32 2147483647, %v594_v39  ;;  %v690_v52 = vand.u32 2147483647, %v674_v62  ;;  %v1682_v34 = vsub.f32 %v1312_v41, %v1314_v42 }
 0x162   :  { %v704_v13 = vsub.f32 %v608_v63, %v688_v18  ;;  %v611_v14 = vand.u32 2147483647, %v595_v12  ;;  %v691_v55 = vand.u32 2147483647, %v675_v16  ;;  %v1439_v47 = vand.u32 2147483647, %v699_v10 }
 0x163   :  { %v1435_v35 = vand.u32 2147483647, %v1682_v34  ;;  %v596_v50 = vsub.f32 %v1035_v24, %v554_v31  ;;  %v676_v29 = vsub.f32 %v1037_v25, %v638_v23  ;;  %v1443_v49 = vand.u32 2147483647, %v700_v46 }
 0x164   :  { %v1445_v32 = vand.u32 2147483647, %v701_v48  ;;  %v1447_v61 = vand.u32 2147483647, %v702_v20  ;;  %v1451_v42 = vand.u32 2147483647, %v703_v36  ;;  %v706_v39 = vsub.f32 %v610_v37, %v690_v52 }
 0x165   :  { %v1454_v24 = vand.u32 2147483647, %v704_v13  ;;  %v707_v25 = vsub.f32 %v611_v14, %v691_v55  ;;  %v562_v63 = vsel %vm547_vm1, %v545_v40, %v537_v56  ;;  %v1461_v12 = vand.u32 2147483647, %v596_v50 }
 0x166   :  { %v646_v10 = vsel %vm547_vm1, %v630_v59, %v622_v54  ;;  %v1475_v31 = vand.u32 2147483647, %v706_v39  ;;  %v581_v54 = vsel %vm79_vm2, %v562_v63, 0.0  ;;  %v1683_v39 = vld [vmem:[#allocation11_spill] sm:$0xff] }
 0x167   :  { %v1480_v23 = vand.u32 2147483647, %v707_v25  ;;  %v597_v34 = vsub.f32 %v1043_v26, %v581_v54 }
 0x181   :  { %v1369_v57 = vpop.permute.xlu0 %195 }
 0x185   :  { %v1393_v11 = vpop.permute.xlu0 %403  ;;  %v198_v44 = vpop.permute.xlu1 %197 }
 0x186   :  { %v244_v18 = vsel %vm77_vm3, %v198_v44, 0.0  ;;  %v451_v20 = vsel %vm77_vm3, %v1393_v11, 0.0  ;;  %v692_v44 = vand.u32 2147483647, %v676_v29 }
 0x187   :  { %v260_v46 = vsub.f32 %v244_v18, %v947_v2  ;;  %v467_v59 = vsub.f32 %v451_v20, %v941_v1  ;;  %v661_v2 = vsel %vm79_vm2, %v646_v10, 0.0 }
 0x188   :  { %v708_v1 = vsub.f32 %v1461_v12, %v692_v44  ;;  %v677_v29 = vsub.f32 %v1045_v27, %v661_v2 }
 0x189   :  { %v406_v60 = vpop.permute.xlu1 %405  ;;  %v200_v17 = vpop.permute.xlu0 %199  ;;  %v276_v37 = vand.u32 2147483647, %v260_v46  ;;  %v483_v55 = vand.u32 2147483647, %v467_v59  ;;  %v1687_v59 = vld [vmem:[#allocation13_spill] sm:$0xff] }
 0x18a   :  { %v452_v43 = vsel %vm77_vm3, %v406_v60, 0.0  ;;  %v705_v60 = vsub.f32 %v609_v58, %v689_v15  ;;  %v245_v48 = vsel %vm77_vm3, %v200_v17, 0.0 }
 0x18b   :  { %v468_v62 = vsub.f32 %v452_v43, %v949_v3  ;;  %v243_v3 = vsel %vm77_vm3, %v1369_v57, 0.0 }
 0x18c   :  { %v1473_v58 = vand.u32 2147483647, %v705_v60  ;;  %v259_v17 = vsub.f32 %v243_v3, %v939_v0 }
 0x18d   :  { %v408_v45 = vpop.permute.xlu1 %407  ;;  %v202_v51 = vpop.permute.xlu0 %201  ;;  %v484_v57 = vand.u32 2147483647, %v468_v62 }
 0x18e   :  { %v453_v56 = vsel %vm77_vm3, %v408_v45, 0.0  ;;  %v261_v45 = vsub.f32 %v245_v48, %v955_v4  ;;  %v246_v15 = vsel %vm77_vm3, %v202_v51, 0.0  ;;  %v546_v51 = vrot.slane %v1059_v30, 1 }
 0x18f   :  { %v469_v36 = vsub.f32 %v453_v56, %v957_v5  ;;  %v538_v5 = vrot.slane %v1051_v28, 1  ;;  %v500_v43 = vsub.f32 %v276_v37, %v484_v57  ;;  %v262_v50 = vsub.f32 %v246_v15, %v963_v6  ;;  %v1689_v15 = vld [vmem:[#allocation15_spill] sm:$0xff] }
 0x190   :  { %v275_v18 = vand.u32 2147483647, %v259_v17  ;;  %v277_v26 = vand.u32 2147483647, %v261_v45  ;;  %v1688_v45 = vld [vmem:[#allocation14_spill] sm:$0xff] }
 0x191   :  { %v410_v41 = vpop.permute.xlu1 %409  ;;  %v204_v16 = vpop.permute.xlu0 %203  ;;  %v1512_v20 = vsel %vm547_vm1, %v538_v5, %v546_v51  ;;  %v516_v3 = vand.u32 2147483647, %v500_v43  ;;  %v278_v46 = vand.u32 2147483647, %v262_v50 }
 0x192   :  { %v454_v52 = vsel %vm77_vm3, %v410_v41, 0.0  ;;  %v247_v13 = vsel %vm77_vm3, %v204_v16, 0.0  ;;  %v485_v41 = vand.u32 2147483647, %v469_v36  ;;  %v499_v10 = vsub.f32 %v275_v18, %v483_v55 }
 0x193   :  { %v470_v16 = vsub.f32 %v454_v52, %v965_v7  ;;  %v263_v60 = vsub.f32 %v247_v13, %v971_v8  ;;  %v1684_v7 = vld [vmem:[#allocation22_spill] sm:$0xff]  ;;  %v1685_v8 = vld [vmem:[#allocation23_spill] sm:$0xff] }
 0x194   :  { %v623_v12 = vrot.slane %v1684_v7, 1  ;;  %v631_v44 = vrot.slane %v1685_v8, 1  ;;  %v501_v56 = vsub.f32 %v277_v26, %v485_v41  ;;  %v515_v43 = vand.u32 2147483647, %v499_v10 }
 0x195   :  { %v412_v40 = vpop.permute.xlu1 %411  ;;  %v206_v11 = vpop.permute.xlu0 %205  ;;  %v279_v2 = vand.u32 2147483647, %v263_v60  ;;  %v598_v26 = vsub.f32 %v1051_v28, %v1512_v20 }
 0x196   :  { %v455_v0 = vsel %vm77_vm3, %v412_v40, 0.0  ;;  %v248_v25 = vsel %vm77_vm3, %v206_v11, 0.0  ;;  %v486_v40 = vand.u32 2147483647, %v470_v16  ;;  %v1686_v11 = vld [vmem:[#allocation12_spill] sm:$0xff]  ;;  %v1530_v55 = vsel %vm547_vm1, %v623_v12, %v631_v44 }
 0x197   :  { %v471_v62 = vsub.f32 %v455_v0, %v1683_v39  ;;  %v264_v54 = vsub.f32 %v248_v25, %v1686_v11  ;;  %v1522_v0 = vand.u32 2147483647, %v708_v1  ;;  %v729_v1 = vadd.f32 %v1422_v9, %v516_v3  ;;  %v1690_v25 = vld [vmem:[#allocation16_spill] sm:$0xff] }
 0x198   :  { %v517_v16 = vand.u32 2147483647, %v501_v56  ;;  %v678_v28 = vsub.f32 %v1684_v7, %v1530_v55  ;;  %v563_v3 = vsel %vm547_vm1, %v546_v51, %v538_v5  ;;  %v1693_v5 = vld [vmem:[#allocation18_spill] sm:$0xff]  ;;  %v818_v55 = vld [vmem:[#allocation2 + $0x68] sm:$0xff] }
 0x199   :  { %v414_v4 = vpop.permute.xlu1 %413  ;;  %v208_v14 = vpop.permute.xlu0 %207  ;;  %v487_v17 = vand.u32 2147483647, %v471_v62  ;;  %v280_v41 = vand.u32 2147483647, %v264_v54 }
 0x19a   :  { %v456_v30 = vsel %vm77_vm3, %v414_v4, 0.0  ;;  %v249_v6 = vsel %vm77_vm3, %v208_v14, 0.0  ;;  %v1524_v4 = vand.u32 2147483647, %v597_v34  ;;  %v1526_v14 = vand.u32 2147483647, %v677_v29 }
 0x19b   :  { %v472_v57 = vsub.f32 %v456_v30, %v1687_v59  ;;  %v265_v36 = vsub.f32 %v249_v6, %v1688_v45  ;;  %v502_v34 = vsub.f32 %v278_v46, %v486_v40  ;;  %v503_v60 = vsub.f32 %v279_v2, %v487_v17  ;;  %v1691_v6 = vld [vmem:[#allocation17_spill] sm:$0xff] }
 0x19c   :  { %v709_v10 = vsub.f32 %v1524_v4, %v1526_v14  ;;  %v1553_v46 = vsel %vm547_vm1, %v631_v44, %v623_v12  ;;  %v746_v59 = vsel %vm744_vm4, %v729_v1, 0.0 }
 0x19d   :  { %v416_v63 = vpop.permute.xlu1 %415  ;;  %v210_v27 = vpop.permute.xlu0 %209  ;;  %v488_v29 = vand.u32 2147483647, %v472_v57  ;;  %v281_v39 = vand.u32 2147483647, %v265_v36  ;;  %v518_v40 = vand.u32 2147483647, %v502_v34  ;;  %v730_v57 = vadd.f32 %v1435_v35, %v517_v16 }
 0x19e   :  { %v457_v48 = vsel %vm77_vm3, %v416_v63, 0.0  ;;  %v250_v50 = vsel %vm77_vm3, %v210_v27, 0.0  ;;  %v519_v2 = vand.u32 2147483647, %v503_v60  ;;  %v1569_v35 = vsel %vm79_vm2, %v563_v3, 0.0 }
 0x19f   :  { %v473_v37 = vsub.f32 %v457_v48, %v1689_v15  ;;  %v266_v30 = vsub.f32 %v250_v50, %v1690_v25  ;;  %v1692_v48 = vld [vmem:[#allocation24_spill] sm:$0xff]  ;;  %v504_v11 = vsub.f32 %v280_v41, %v488_v29  ;;  %v748_v29 = vsel %vm744_vm4, %v730_v57, 0.0 }
 0x1a0   :  { %v728_v56 = vadd.f32 %v1692_v48, %v515_v43  ;;  %v732_v16 = vadd.f32 %v1443_v49, %v519_v2 }
 0x1a1   :  { %v418_v52 = vpop.permute.xlu1 %417  ;;  %v212_v13 = vpop.permute.xlu0 %211  ;;  %v489_v62 = vand.u32 2147483647, %v473_v37  ;;  %v282_v45 = vand.u32 2147483647, %v266_v30  ;;  %v1695_v37 = vld [vmem:[#allocation20_spill] sm:$0xff]  ;;  %v1696_v30 = vld [vmem:[#allocation21_spill] sm:$0xff] }
 0x1a2   :  { %v458_v18 = vsel %vm77_vm3, %v418_v52, 0.0  ;;  %v251_v9 = vsel %vm77_vm3, %v212_v13, 0.0  ;;  %v745_v50 = vsel %vm744_vm4, %v728_v56, 0.0  ;;  %v520_v1 = vand.u32 2147483647, %v504_v11 }
 0x1a3   :  { %v474_v63 = vsub.f32 %v458_v18, %v1691_v6  ;;  %v505_v17 = vsub.f32 %v281_v39, %v489_v62  ;;  %v267_v51 = vsub.f32 %v251_v9, %v1693_v5  ;;  %v731_v18 = vadd.f32 %v1439_v47, %v518_v40 }
 0x1a4   :  { %v747_v41 = vadd.f32 %v746_v59, %v745_v50  ;;  %v733_v49 = vadd.f32 %v1445_v32, %v520_v1  ;;  %v752_v40 = vsel %vm744_vm4, %v732_v16, 0.0 }
 0x1a5   :  { %v420_v27 = vpop.permute.xlu1 %419  ;;  %v214_v8 = vpop.permute.xlu0 %213  ;;  %v490_v36 = vand.u32 2147483647, %v474_v63  ;;  %v521_v60 = vand.u32 2147483647, %v505_v17  ;;  %v283_v62 = vand.u32 2147483647, %v267_v51 }
 0x1a6   :  { %v459_v20 = vsel %vm77_vm3, %v420_v27, 0.0  ;;  %v252_v54 = vsel %vm77_vm3, %v214_v8, 0.0  ;;  %v749_v56 = vadd.f32 %v748_v29, %v747_v41  ;;  %v754_v32 = vsel %vm744_vm4, %v733_v49, 0.0 }
 0x1a7   :  { %v475_v12 = vsub.f32 %v459_v20, %v1694_v33  ;;  %v268_v52 = vsub.f32 %v252_v54, %v1695_v37  ;;  %v506_v39 = vsub.f32 %v282_v45, %v490_v36  ;;  %v750_v20 = vsel %vm744_vm4, %v731_v18, 0.0 }
 0x1a8   :  { %v734_v11 = vadd.f32 %v1447_v61, %v521_v60  ;;  %v1587_v54 = vand.u32 2147483647, %v598_v26  ;;  %v751_v5 = vadd.f32 %v750_v20, %v749_v56  ;;  %v812_v61 = vld [vmem:[#allocation2 + $0x58] sm:$0xff] }
 0x1a9   :  { %v422_v44 = vpop.permute.xlu1 %421  ;;  %v216_v15 = vpop.permute.xlu0 %215  ;;  %v491_v25 = vand.u32 2147483647, %v475_v12  ;;  %v284_v8 = vand.u32 2147483647, %v268_v52  ;;  %v522_v59 = vand.u32 2147483647, %v506_v39 }
 0x1aa   :  { %v460_v13 = vsel %vm77_vm3, %v422_v44, 0.0  ;;  %v253_v43 = vsel %vm77_vm3, %v216_v15, 0.0  ;;  %v813_v12 = vld [vmem:[#allocation5 + $0x60] sm:$0xff]  ;;  %v753_v15 = vadd.f32 %v752_v40, %v751_v5  ;;  %v756_v37 = vsel %vm744_vm4, %v734_v11, 0.0  ;;  %v819_v11 = vld [vmem:[#allocation5 + $0x70] sm:$0xff] }
 0x1ab   :  { %v476_v34 = vsub.f32 %v460_v13, %v1013_v19  ;;  %v269_v6 = vsub.f32 %v253_v43, %v1696_v30  ;;  %v507_v57 = vsub.f32 %v283_v62, %v491_v25  ;;  %v1598_v52 = vand.u32 2147483647, %v709_v10  ;;  %v814_v39 = vld [vmem:[#allocation2 + $0x60] sm:$0xff]  ;;  %v816_v25 = vld [vmem:[#allocation5 + $0x78] sm:$0xff] }
 0x1ac   :  { %v663_v13 = vsel %vm79_vm2, %v1553_v46, 0.0  ;;  %v735_v43 = vadd.f32 %v1451_v42, %v522_v59  ;;  %v755_v29 = vadd.f32 %v754_v32, %v753_v15  ;;  %v815_v46 = vld [vmem:[#allocation5 + $0x68] sm:$0xff]  ;;  %v599_v30 = vsub.f32 %v816_v25, %v1569_v35 }
 0x1ad   :  { %v424_v63 = vpop.permute.xlu1 %423  ;;  %v218_v27 = vpop.permute.xlu0 %217  ;;  %v492_v9 = vand.u32 2147483647, %v476_v34  ;;  %v285_v2 = vand.u32 2147483647, %v269_v6  ;;  %v523_v50 = vand.u32 2147483647, %v507_v57 }
 0x1ae   :  { %v461_v47 = vsel %vm77_vm3, %v424_v63, 0.0  ;;  %v254_v19 = vsel %vm77_vm3, %v218_v27, 0.0  ;;  %v757_v42 = vadd.f32 %v756_v37, %v755_v29  ;;  %v817_v6 = vld [vmem:[#allocation2 + $0x78] sm:$0xff]  ;;  %v694_v27 = vand.u32 2147483647, %v678_v28 }
 0x1af   :  { %v477_v3 = vsub.f32 %v461_v47, %v1021_v21  ;;  %v270_v48 = vsub.f32 %v254_v19, %v1027_v22  ;;  %v508_v51 = vsub.f32 %v284_v8, %v492_v9  ;;  %v679_v63 = vsub.f32 %v817_v6, %v663_v13 }
 0x1b0   :  { %v758_v8 = vsel %vm744_vm4, %v735_v43, 0.0  ;;  %v736_v9 = vadd.f32 %v1454_v24, %v523_v50  ;;  %v615_v57 = vand.u32 2147483647, %v599_v30 }
 0x1b1   :  { %v493_v17 = vand.u32 2147483647, %v477_v3  ;;  %v426_v45 = vpop.permute.xlu1 %425  ;;  %v220_v36 = vpop.permute.xlu0 %219  ;;  %v286_v33 = vand.u32 2147483647, %v270_v48  ;;  %v524_v16 = vand.u32 2147483647, %v508_v51  ;;  %v759_v24 = vadd.f32 %v758_v8, %v757_v42 }
 0x1b2   :  { %v462_v21 = vsel %vm77_vm3, %v426_v45, 0.0  ;;  %v255_v22 = vsel %vm77_vm3, %v220_v36, 0.0 }
 0x1b3   :  { %v478_v26 = vsub.f32 %v462_v21, %v812_v61  ;;  %v271_v44 = vsub.f32 %v255_v22, %v813_v12  ;;  %v509_v18 = vsub.f32 %v285_v2, %v493_v17  ;;  %v737_v3 = vadd.f32 %v1473_v58, %v524_v16  ;;  %v820_v12 = vld [vmem:[#allocation2 + $0x70] sm:$0xff] }
 0x1b4   :  { %v695_v2 = vand.u32 2147483647, %v679_v63  ;;  %v710_v17 = vsub.f32 %v1587_v54, %v694_v27  ;;  %v760_v58 = vsel %vm744_vm4, %v736_v9, 0.0 }
 0x1b5   :  { %v494_v1 = vand.u32 2147483647, %v478_v26  ;;  %v428_v34 = vpop.permute.xlu1 %427  ;;  %v222_v41 = vpop.permute.xlu0 %221  ;;  %v287_v10 = vand.u32 2147483647, %v271_v44  ;;  %v525_v47 = vand.u32 2147483647, %v509_v18 }
 0x1b6   :  { %v463_v60 = vsel %vm77_vm3, %v428_v34, 0.0  ;;  %v256_v4 = vsel %vm77_vm3, %v222_v41, 0.0  ;;  %v762_v22 = vsel %vm744_vm4, %v737_v3, 0.0  ;;  %v726_v37 = vand.u32 2147483647, %v710_v17 }
 0x1b7   :  { %v510_v14 = vsub.f32 %v286_v33, %v494_v1  ;;  %v479_v38 = vsub.f32 %v463_v60, %v814_v39  ;;  %v272_v62 = vsub.f32 %v256_v4, %v815_v46  ;;  %v738_v45 = vadd.f32 %v1475_v31, %v525_v47 }
 0x1b8   :  { %v761_v31 = vadd.f32 %v760_v58, %v759_v24  ;;  %v711_v29 = vsub.f32 %v615_v57, %v695_v2 }
 0x1b9   :  { %v495_v19 = vand.u32 2147483647, %v479_v38  ;;  %v430_v20 = vpop.permute.xlu1 %429  ;;  %v224_v49 = vpop.permute.xlu0 %223  ;;  %v526_v48 = vand.u32 2147483647, %v510_v14  ;;  %v288_v7 = vand.u32 2147483647, %v272_v62 }
 0x1ba   :  { %v464_v35 = vsel %vm77_vm3, %v430_v20, 0.0  ;;  %v257_v56 = vsel %vm77_vm3, %v224_v49, 0.0  ;;  %v764_v13 = vsel %vm744_vm4, %v738_v45, 0.0  ;;  %v763_v1 = vadd.f32 %v762_v22, %v761_v31 }
 0x1bb   :  { %v511_v40 = vsub.f32 %v287_v10, %v495_v19  ;;  %v480_v28 = vsub.f32 %v464_v35, %v818_v55  ;;  %v273_v59 = vsub.f32 %v257_v56, %v819_v11  ;;  %v739_v32 = vadd.f32 %v1480_v23, %v526_v48 }
 0x1bc   :  { %v765_v10 = vadd.f32 %v764_v13, %v763_v1  ;;  %v727_v42 = vand.u32 2147483647, %v711_v29 }
 0x1bd   :  { %v527_v36 = vand.u32 2147483647, %v511_v40  ;;  %v496_v5 = vand.u32 2147483647, %v480_v28  ;;  %v432_v51 = vpop.permute.xlu1 %431  ;;  %v226_v21 = vpop.permute.xlu0 %225  ;;  %v289_v54 = vand.u32 2147483647, %v273_v59 }
 0x1be   :  { %v465_v33 = vsel %vm77_vm3, %v432_v51, 0.0  ;;  %v258_v61 = vsel %vm77_vm3, %v226_v21, 0.0  ;;  %v766_v34 = vsel %vm744_vm4, %v739_v32, 0.0 }
 0x1bf   :  { %v512_v26 = vsub.f32 %v288_v7, %v496_v5  ;;  %v481_v44 = vsub.f32 %v465_v33, %v820_v12  ;;  %v274_v15 = vsub.f32 %v258_v61, %v816_v25  ;;  %v740_v43 = vadd.f32 %v1522_v0, %v527_v36 }
 0x1c0   :  { %v767_v46 = vadd.f32 %v766_v34, %v765_v10 }
 0x1c1   :  { %v528_v50 = vand.u32 2147483647, %v512_v26  ;;  %v497_v18 = vand.u32 2147483647, %v481_v44  ;;  %v434_v23 = vpop.permute.xlu1 %433  ;;  %v290_v4 = vand.u32 2147483647, %v274_v15 }
 0x1c2   :  { %v466_v41 = vsel %vm77_vm3, %v434_v23, 0.0  ;;  %v768_v0 = vsel %vm744_vm4, %v740_v43, 0.0 }
 0x1c3   :  { %v741_v16 = vadd.f32 %v1598_v52, %v528_v50  ;;  %v513_v60 = vsub.f32 %v289_v54, %v497_v18  ;;  %v482_v14 = vsub.f32 %v466_v41, %v817_v6  ;;  %v769_v63 = vadd.f32 %v768_v0, %v767_v46 }
 0x1c5   :  { %v529_v39 = vand.u32 2147483647, %v513_v60  ;;  %v498_v38 = vand.u32 2147483647, %v482_v14  ;;  %v770_v30 = vsel %vm744_vm4, %v741_v16, 0.0 }
 0x1c6   :  { %v771_v8 = vadd.f32 %v770_v30, %v769_v63 }
 0x1c7   :  { %v514_v62 = vsub.f32 %v290_v4, %v498_v38  ;;  %v742_v25 = vadd.f32 %v726_v37, %v529_v39 }
 0x1c9   :  { %v530_v53 = vand.u32 2147483647, %v514_v62  ;;  %v772_v27 = vsel %vm744_vm4, %v742_v25, 0.0 }
 0x1ca   :  { %v773_v9 = vadd.f32 %v772_v27, %v771_v8 }
 0x1cb   :  { %v743_v52 = vadd.f32 %v727_v42, %v530_v53 }
 0x1cd   :  { %v774_v6 = vsel %vm744_vm4, %v743_v52, 0.0 }
 0x1ce   :  { %v775_v47 = vadd.f32 %v774_v6, %v773_v9 }
 0x1d0   :  { %776 = vadd.xlane.f32.xlu0 %v775_v47 }
 0x25d   :  { %v777_v19 = vpop.xlane.xlu0 %776 }
 0x25e   :  { %v778_v20 = vrot.slane %v777_v19, 4 }
 0x260   :  { %v779_v49 = vadd.f32 %v778_v20, %v777_v19 }
 0x262   :  { %v780_v3 = vrot.slane %v779_v49, 2 }
 0x264   :  { %v781_v48 = vadd.f32 %v780_v3, %v779_v49 }
 0x266   :  { %v782_v35 = vrot.slane %v781_v48, 1 }
 0x268   :  { %v783_v56 = vadd.f32 %v782_v35, %v781_v48 }
 0x26a   :  { %803 = vpush %v783_v56 }
 0x29b   :  { %s804_s9 = spop %803 }
 0x29c   :  { %v785_v40 = vstv %s804_s9 }
 0x29d   :  { %786 = vst [vmem:[#allocation7] sm:$0xff] %v785_v40 }
 0x29e   :  { %876 = shalt.err (!%p873_p6)
}
 0x29f   :  { %s877_s13 = scalar_lea.hbm %s1652_s2, 128 }
 0x2a0   :  { %p878_p7 = scmp.ne.s32.totalorder %s1652_s2, %s877_s13  ;;  %p881_p8 = scmp.lt.u32.totalorder %s877_s13, %s1652_s2 }
 0x2a2   :  { %p883_p9 = pnand %p881_p8, %p878_p7 }
 0x2a4   :  { %886 = shalt.err (!%p883_p9)
}
 0x2a5   :  { %796 = dma.vmem_to_hbm [thread:$0]  %s794_s8, 128, %s1652_s2, [#allocation4]  }
 0x2a6   :  { %891 = dma.done.wait [#allocation4], 128  }
 0x2a7   :  { %892 = vsyncadd [#allocation4], 4294967168 }
 0x2a8   :  { %800 = vsyncpa [#allocation3], 1 }
 0x2a9   :  { %801 = vsyncpa [#allocation6], 1 }
 0x2aa   :  { %802 = vsyncpa [#allocation4], 1 }

</bundles_post_ra>
